<compile_context>
chip_gen: v6e
topology: v6e:2x2x1
jax: 0.10.0
libtpu: 0.0.40
codegen_flags: <defaults>
</compile_context>

<pallas_src>
import functools

import jax
import jax.numpy as jnp
from jax import lax
from jax.experimental import pallas as pl
from jax.experimental.pallas import tpu as pltpu


def _round_up(x, m):
    return (x + m - 1) // m * m


def _cosine_sim_kernel(vec_ref, mat_ref, out_ref, acc_ref, *, true_n, tile_n):
    """One (tile_n, D) row-tile per grid step.

    Grid: (splits, blocks_per_split). Leading axis is "parallel" (sharded
    across TensorCores on v7x); trailing axis streams row tiles and reduces
    into a per-split VMEM accumulator.
    """
    c = pl.program_id(0)
    j = pl.program_id(1)

    @pl.when(j == 0)
    def _init():
        acc_ref[...] = jnp.zeros_like(acc_ref)

    m = mat_ref[...]                                   # (TN, D), native dtype
    v = vec_ref[...]                                   # (1, D),  native dtype
    d = m.shape[1]

    # Row contractions on the (otherwise idle) MXU; f32 accumulation.
    contract = (((1,), (1,)), ((), ()))
    dot = lax.dot_general(m, v, contract,
                          preferred_element_type=jnp.float32)        # (TN, 1)
    ones_row = jnp.ones((1, d), m.dtype)
    sumsq = lax.dot_general(m * m, ones_row, contract,
                            preferred_element_type=jnp.float32)      # (TN, 1)

    # rsqrt -> EUP slot; no per-row divide. ||v|| and 1/N applied in wrapper.
    cos = dot * lax.rsqrt(sumsq)                                      # (TN, 1)

    # Only blocks overhanging the true row count need the tail mask (last block
    # of a split, or fully out-of-bounds blocks on an uneven split). The select
    # discards any NaN produced by unspecified OOB tail data.
    block_start = (c * pl.num_programs(1) + j) * tile_n
    in_bounds = block_start + tile_n <= true_n

    @pl.when(in_bounds)
    def _acc_full():
        acc_ref[...] += cos

    @pl.when(jnp.logical_not(in_bounds))
    def _acc_masked():
        row = block_start + lax.broadcasted_iota(jnp.int32, cos.shape, 0)
        acc_ref[...] += jnp.where(row < true_n, cos, 0.0)

    @pl.when(j == pl.num_programs(1) - 1)
    def _finalize():
        out_ref[0, 0] = jnp.sum(acc_ref[...])


def cosine_similarity_calculator(vector, matrix, tile_rows=None, num_splits=2):
    """vector: (D,), matrix: (N, D). Returns f32 scalar: mean_i cos(matrix[i], vector)."""
    n, d = matrix.shape
    vec2d = vector.reshape(1, d)

    # Byte-based row-tile cap: ~4 MiB per streamed tile buffer. With double
    # buffering plus the in-kernel m*m temporary the total footprint stays
    # around ~16 MiB, under the explicit 32 MiB scoped VMEM limit below.
    bytes_per_row = max(1, d * matrix.dtype.itemsize)
    tile_budget = 4 * 1024 * 1024
    tile_cap = max(8, (tile_budget // bytes_per_row) // 8 * 8)
    if tile_rows is None:
        tile_n = int(min(tile_cap, _round_up(n, 8)))
    else:
        tile_n = int(min(_round_up(tile_rows, 8), tile_cap, _round_up(n, 8)))

    # No row/feature padding of the matrix: last-block overhang is masked
    # in-kernel; full feature dim is the lane block extent directly.
    total_blocks = pl.cdiv(n, tile_n)
    splits = int(num_splits) if total_blocks >= 2 else 1
    blocks_per_split = pl.cdiv(total_blocks, splits)
    grid = (splits, blocks_per_split)

    kernel = functools.partial(_cosine_sim_kernel, true_n=n, tile_n=tile_n)

    partials = pl.pallas_call(
        kernel,
        out_shape=jax.ShapeDtypeStruct((splits, 1), jnp.float32),
        grid_spec=pltpu.PrefetchScalarGridSpec(
            num_scalar_prefetch=0,
            grid=grid,
            in_specs=[
                # Vector: resident across the whole sweep.
                pl.BlockSpec((1, d), lambda c, j: (0, 0)),
                # Matrix: streamed row tiles, split across the parallel axis.
                pl.BlockSpec((tile_n, d),
                             lambda c, j, _bps=blocks_per_split:
                             (c * _bps + j, 0)),
            ],
            out_specs=pl.BlockSpec((1, 1), lambda c, j: (c, 0),
                                   memory_space=pltpu.SMEM),
            scratch_shapes=[pltpu.VMEM((tile_n, 1), jnp.float32)],
        ),
        compiler_params=pltpu.CompilerParams(
            dimension_semantics=("parallel", "arbitrary"),
            vmem_limit_bytes=32 * 1024 * 1024),
    )(vec2d, matrix)

    # Finalize in the wrapper: sum the per-split partials, scale once by
    # 1/(||v|| * N).  (Matches the module: raw division, no eps clamp.)
    v32 = vector.astype(jnp.float32)
    return jnp.sum(partials) / (jnp.linalg.norm(v32) * n)


def _reference(vector, matrix):
    dot = matrix @ vector
    nv = jnp.linalg.norm(vector)
    nm = jnp.linalg.norm(matrix, axis=1)
    return jnp.mean(dot / (nv * nm))


if __name__ == "__main__":
    key = jax.random.PRNGKey(0)
    k1, k2, k3, k4, k5, k6 = jax.random.split(key, 6)

    # Original small test shape: 8 rows, 32 features (single block, single split).
    vector = jax.random.normal(k1, (32,), dtype=jnp.float32)
    matrix = jax.random.normal(k2, (8, 32), dtype=jnp.float32)
    result = jax.block_until_ready(cosine_similarity_calculator(vector, matrix))
    ref = _reference(vector, matrix)
    assert jnp.allclose(result, ref, atol=1e-5, rtol=1e-5), (result, ref)

    # Ragged shape: unpadded feature dim (40) and row-tail masking (13 rows).
    vector2 = jax.random.normal(k3, (40,), dtype=jnp.float32)
    matrix2 = jax.random.normal(k4, (13, 40), dtype=jnp.float32)
    result2 = jax.block_until_ready(cosine_similarity_calculator(vector2, matrix2))
    ref2 = _reference(vector2, matrix2)
    assert jnp.allclose(result2, ref2, atol=1e-5, rtol=1e-5), (result2, ref2)

    # Multi-block grid with a 2-way split: exercises the per-split accumulator,
    # the fully out-of-bounds trailing block, and the wrapper combine.
    vector3 = jax.random.normal(k5, (32,), dtype=jnp.float32)
    matrix3 = jax.random.normal(k6, (24, 32), dtype=jnp.float32)
    result3 = jax.block_until_ready(
        cosine_similarity_calculator(vector3, matrix3, tile_rows=8))
    ref3 = _reference(vector3, matrix3)
    assert jnp.allclose(result3, ref3, atol=1e-5, rtol=1e-5), (result3, ref3)

    print("KERNEL_OK")
</pallas_src>

<mosaic_0001>
module attributes {stable_mosaic.version = 11 : i64} {
  func.func @_cosine_sim_kernel(%arg0: i32, %arg1: i32, %arg2: memref<1x32xf32, #tpu.memory_space<vmem>>, %arg3: memref<8x32xf32, #tpu.memory_space<vmem>>, %arg4: memref<1x1xf32, #tpu.memory_space<smem>>, %arg5: memref<8x1xf32, #tpu.memory_space<vmem>>) attributes {dimension_semantics = [#tpu.dimension_semantics<parallel>, #tpu.dimension_semantics<arbitrary>], iteration_bounds = array<i64: 1, 1>, scalar_prefetch = 0 : i64, scratch_operands = 1 : i64, tpu.core_type = #tpu.core_type<tc>, window_params = [{pipeline_mode = #tpu.pipeline_mode<synchronous>, transform_indices = @transform_0, window_bounds = array<i64: 1, 32>}, {transform_indices = @transform_1, window_bounds = array<i64: 8, 32>}, {transform_indices = @transform_2, window_bounds = array<i64: 1, 1>}]} {
    %c0_i32 = arith.constant 0 : i32
    %0 = arith.cmpi eq, %arg1, %c0_i32 : i32
    %1 = arith.extui %0 : i1 to i32
    %c0_i32_0 = arith.constant 0 : i32
    %2 = arith.cmpi ne, %1, %c0_i32_0 : i32
    scf.if %2 {
      %cst_12 = arith.constant 0.000000e+00 : f32
      %24 = vector.broadcast %cst_12 : f32 to vector<8x1xf32>
      %c0_13 = arith.constant 0 : index
      %c0_14 = arith.constant 0 : index
      %25 = vector.load %arg5[%c0_13, %c0_14] : memref<8x1xf32, #tpu.memory_space<vmem>>, vector<8x1xf32>
      tpu.vector_store %arg5[%c0_13, %c0_14], %24 {strides = array<i32>} : memref<8x1xf32, #tpu.memory_space<vmem>>, vector<8x1xf32>,
    } else {
    }
    %c0 = arith.constant 0 : index
    %c0_1 = arith.constant 0 : index
    %3 = vector.load %arg3[%c0, %c0_1] : memref<8x32xf32, #tpu.memory_space<vmem>>, vector<8x32xf32>
    %c0_2 = arith.constant 0 : index
    %c0_3 = arith.constant 0 : index
    %4 = vector.load %arg2[%c0_2, %c0_3] : memref<1x32xf32, #tpu.memory_space<vmem>>, vector<1x32xf32>
    %cst = arith.constant dense<0.000000e+00> : vector<8x1xf32>
    %5 = tpu.matmul %3, %4, %cst {dimension_numbers = #tpu.dot_dimension_numbers<[1], [1], [0], [0], [0, 0, 1, 0], [], []>} : vector<8x32xf32>, vector<1x32xf32>, vector<8x1xf32> -> vector<8x1xf32>
    %cst_4 = arith.constant 1.000000e+00 : f32
    %6 = vector.broadcast %cst_4 : f32 to vector<1x32xf32>
    %7 = arith.mulf %3, %3 : vector<8x32xf32>
    %cst_5 = arith.constant dense<0.000000e+00> : vector<8x1xf32>
    %8 = tpu.matmul %7, %6, %cst_5 {dimension_numbers = #tpu.dot_dimension_numbers<[1], [1], [0], [0], [0, 0, 1, 0], [], []>} : vector<8x32xf32>, vector<1x32xf32>, vector<8x1xf32> -> vector<8x1xf32>
    %9 = math.rsqrt %8 : vector<8x1xf32>
    %10 = arith.mulf %5, %9 : vector<8x1xf32>
    %c1_i32 = arith.constant 1 : i32
    %11 = arith.muli %arg0, %c1_i32 : i32
    %12 = arith.addi %11, %arg1 : i32
    %c8_i32 = arith.constant 8 : i32
    %13 = arith.muli %12, %c8_i32 : i32
    %c8_i32_6 = arith.constant 8 : i32
    %14 = arith.addi %13, %c8_i32_6 : i32
    %c8_i32_7 = arith.constant 8 : i32
    %15 = arith.cmpi sle, %14, %c8_i32_7 : i32
    %16 = arith.extui %15 : i1 to i32
    %c0_i32_8 = arith.constant 0 : i32
    %17 = arith.cmpi ne, %16, %c0_i32_8 : i32
    scf.if %17 {
      %c0_12 = arith.constant 0 : index
      %c0_13 = arith.constant 0 : index
      %24 = vector.load %arg5[%c0_12, %c0_13] : memref<8x1xf32, #tpu.memory_space<vmem>>, vector<8x1xf32>
      %25 = arith.addf %24, %10 : vector<8x1xf32>
      %c0_14 = arith.constant 0 : index
      %c0_15 = arith.constant 0 : index
      %26 = vector.load %arg5[%c0_14, %c0_15] : memref<8x1xf32, #tpu.memory_space<vmem>>, vector<8x1xf32>
      tpu.vector_store %arg5[%c0_14, %c0_15], %25 {strides = array<i32>} : memref<8x1xf32, #tpu.memory_space<vmem>>, vector<8x1xf32>,
    } else {
    }
    %true = arith.constant true
    %18 = arith.xori %15, %true : i1
    %19 = arith.extui %18 : i1 to i32
    %c0_i32_9 = arith.constant 0 : i32
    %20 = arith.cmpi ne, %19, %c0_i32_9 : i32
    scf.if %20 {
      %24 = tpu.iota {dimensions = array<i32: 0>} : vector<8x1xi32>
      %25 = vector.broadcast %13 : i32 to vector<8x1xi32>
      %26 = arith.addi %25, %24 : vector<8x1xi32>
      %c0_12 = arith.constant 0 : index
      %c0_13 = arith.constant 0 : index
      %27 = vector.load %arg5[%c0_12, %c0_13] : memref<8x1xf32, #tpu.memory_space<vmem>>, vector<8x1xf32>
      %c8_i32_14 = arith.constant 8 : i32
      %28 = vector.broadcast %c8_i32_14 : i32 to vector<8x1xi32>
      %29 = arith.cmpi slt, %26, %28 : vector<8x1xi32>
      %cst_15 = arith.constant 0.000000e+00 : f32
      %30 = vector.broadcast %cst_15 : f32 to vector<8x1xf32>
      %31 = arith.select %29, %10, %30 : vector<8x1xi1>, vector<8x1xf32>
      %32 = arith.addf %27, %31 : vector<8x1xf32>
      %c0_16 = arith.constant 0 : index
      %c0_17 = arith.constant 0 : index
      %33 = vector.load %arg5[%c0_16, %c0_17] : memref<8x1xf32, #tpu.memory_space<vmem>>, vector<8x1xf32>
      tpu.vector_store %arg5[%c0_16, %c0_17], %32 {strides = array<i32>} : memref<8x1xf32, #tpu.memory_space<vmem>>, vector<8x1xf32>,
    } else {
    }
    %c0_i32_10 = arith.constant 0 : i32
    %21 = arith.cmpi eq, %arg1, %c0_i32_10 : i32
    %22 = arith.extui %21 : i1 to i32
    %c0_i32_11 = arith.constant 0 : i32
    %23 = arith.cmpi ne, %22, %c0_i32_11 : i32
    scf.if %23 {
      %c0_12 = arith.constant 0 : index
      %c0_13 = arith.constant 0 : index
      %24 = vector.load %arg5[%c0_12, %c0_13] : memref<8x1xf32, #tpu.memory_space<vmem>>, vector<8x1xf32>
      %25 = vector.shape_cast %24 : vector<8x1xf32> to vector<1x8x1xf32>
      %cst_14 = arith.constant dense<0.000000e+00> : vector<1xf32>
      %26 = vector.multi_reduction <add>, %25, %cst_14 [1, 2] : vector<1x8x1xf32> to vector<1xf32>
      %27 = vector.shape_cast %26 : vector<1xf32> to vector<1x1x1xf32>
      %28 = vector.extract %27[0, 0, 0] : f32 from vector<1x1x1xf32>
      %c0_15 = arith.constant 0 : index
      %c0_16 = arith.constant 0 : index
      %29 = memref.load %arg4[%c0_15, %c0_16] : memref<1x1xf32, #tpu.memory_space<smem>>
      memref.store %28, %arg4[%c0_15, %c0_16] : memref<1x1xf32, #tpu.memory_space<smem>>
    } else {
    }
    return
  }
  func.func @transform_0(%arg0: i32, %arg1: i32) -> (i32, i32) {
    %c0_i32 = arith.constant 0 : i32
    %c0_i32_0 = arith.constant 0 : i32
    %c0_i32_1 = arith.constant 0 : i32
    return %c0_i32, %c0_i32_0 : i32, i32
  }
  func.func @transform_1(%arg0: i32, %arg1: i32) -> (i32, i32) {
    %c1_i32 = arith.constant 1 : i32
    %0 = arith.muli %arg0, %c1_i32 : i32
    %1 = arith.addi %0, %arg1 : i32
    %c0_i32 = arith.constant 0 : i32
    %c0_i32_0 = arith.constant 0 : i32
    return %1, %c0_i32 : i32, i32
  }
  func.func @transform_2(%arg0: i32, %arg1: i32) -> (i32, i32) {
    %c0_i32 = arith.constant 0 : i32
    %c0_i32_0 = arith.constant 0 : i32
    return %arg0, %c0_i32 : i32, i32
  }
}

</mosaic_0001>

<bundles_post_ra>
// kernel: tpu_custom_call.1
= control target key start
LH: loop header
LB: loop body
LE: loop exit
PB: predicated region body
PF: predicated region fallthrough
CT: control target
= control target key end

     0   :  { %7 = vsyncpa [#allocation4], 0  ;;  %s213_s0 = inlined_call_operand.hbm [shape: f32[1,32], index: 0, kind: input, shape index: {}]   ;;  %s214_s1 = inlined_call_operand.hbm [shape: f32[8,32], index: 1, kind: input, shape index: {}]   ;;  %s215_s2 = inlined_call_operand.hbm [shape: f32[1,1], index: 2, kind: output, shape index: {}]  }
   0x1   :  { %8 = vsyncpa [#allocation7], 0 }
   0x2   :  { %9 = vsyncpa [#allocation5], 0  ;;  %s185_s9 = smov [#allocation3]   ;;  %s186_s11 = smov [#allocation6]  }
   0x3   :  { %s16_s10 = sshll.u32 %s185_s9, 4  ;;  %s29_s12 = sshll.u32 %s186_s11, 4  ;;  %s17_s10 = int_to_ptr.vmem [resolvable:$true] %s16_s10  ;;  %s30_s12 = int_to_ptr.vmem [resolvable:$true] %s29_s12 }
   0x4   :  { %s139_s13 = scalar_lea.vmem %s17_s10, 16  ;;  %s143_s14 = scalar_lea.vmem %s17_s10, 32 }
   0x5   :  { %p140_p0 = scmp.ne.s32.totalorder %s17_s10, %s139_s13  ;;  %p144_p1 = scmp.lt.s32.totalorder %s17_s10, %s17_s10 }
   0x6   :  { %p145_p2 = scmp.lt.s32.totalorder %s143_s14, %s139_s13 }
   0x8   :  { %p146_p3 = por %p145_p2, %p144_p1 }
   0xa   :  { %p147_p4 = pnand %p146_p3, %p140_p0 }
   0xc   :  { %150 = shalt.err (!%p147_p4)
}
   0xd   :  { %19 = dma.hbm_to_vmem [thread:$0]  %s213_s0, 16, %s17_s10, [#allocation4]  }
   0xe   :  { %s159_s17 = scalar_lea.vmem %s30_s12, 128  ;;  %p164_p6 = scmp.lt.s32.totalorder %s30_s12, %s30_s12 }
   0xf   :  { %p160_p5 = scmp.ne.s32.totalorder %s30_s12, %s159_s17  ;;  %p165_p7 = scmp.lt.s32.totalorder %s159_s17, %s159_s17 }
  0x11   :  { %p166_p8 = por %p165_p7, %p164_p6 }
  0x13   :  { %p167_p9 = pnand %p166_p8, %p160_p5 }
  0x15   :  { %170 = shalt.err (!%p167_p9)
}
  0x16   :  { %32 = dma.hbm_to_vmem [thread:$0]  %s214_s1, 128, %s30_s12, [#allocation7]  }
  0x17   :  { %179 = dma.done.wait [#allocation4], 16  }
  0x18   :  { %180 = vsyncadd [#allocation4], 4294967280 }
  0x19   :  { %181 = dma.done.wait [#allocation7], 128  }
  0x1a   :  { %182 = vsyncadd [#allocation7], 4294967168  ;;  %v46_v0 = vld [vmem:[#allocation6] sm:$0xff]  ;;  %vm55_vm0 = vcmask 261120   ;;  %v122_v1 = vld [vmem:[#allocation3] ss:$0 sm:$0xff] }
  0x1b   :  { %v59_v2 = vmul.f32 %v46_v0, %v46_v0  ;;  %v54_v3 = vmul.f32 %v122_v1, %v46_v0  ;;  %vm44_vm1 = vcmask 7168   ;;  %v187_v6 = vmov 0.0   ;;  %s188_s1 = smov [#allocation8]  }
  0x1c   :  { %45 = vst.msk [vmem:[#allocation2] sm:$0xff] %vm44_vm1, %v187_v6 }
  0x1d   :  { %v60_v4 = vsel %vm55_vm0, %v59_v2, 0.0  ;;  %v56_v5 = vsel %vm55_vm0, %v54_v3, 0.0 }
  0x1e   :  { %61 = vadd.xlane.f32.xlu0 %v60_v4 }
  0x22   :  { %57 = vadd.xlane.f32.xlu0 %v56_v5 }
  0x23   :  { %v72_v10 = vld [vmem:[#allocation2] sm:$0xff] }
  0xa7   :  { %v62_v7 = vpop.xlane.xlu0 %61 }
  0xa8   :  { %129 = vrsqrt.f32 %v62_v7 }
  0xab   :  { %v58_v8 = vpop.xlane.xlu0 %57 }
  0xb5   :  { %v130_v9 = vpop.eup %129 }
  0xb6   :  { %v64_v11 = vmul.f32 %v130_v9, %v58_v8 }
  0xb8   :  { %v73_v12 = vadd.f32 %v72_v10, %v64_v11 }
  0xba   :  { %75 = vst.msk [vmem:[#allocation2] sm:$0xff] %vm44_vm1, %v73_v12 }
  0xc1   :  { %v93_v13 = vld [vmem:[#allocation2] sm:$0xff] }
  0xc2   :  { %v95_v14 = vsel %vm44_vm1, %v93_v13, 0.0 }
  0xc3   :  { %96 = vadd.xlane.f32.xlu1 %v95_v14 }
 0x14c   :  { %v97_v15 = vpop.xlane.xlu1 %96 }
 0x14d   :  { %v98_v16 = vrot.slane %v97_v15, 4 }
 0x14f   :  { %v99_v17 = vadd.f32 %v98_v16, %v97_v15 }
 0x151   :  { %v100_v18 = vrot.slane %v99_v17, 2 }
 0x153   :  { %v101_v19 = vadd.f32 %v100_v18, %v99_v17 }
 0x155   :  { %v102_v20 = vrot.slane %v101_v19, 1 }
 0x157   :  { %v103_v21 = vadd.f32 %v102_v20, %v101_v19 }
 0x159   :  { %123 = vpush %v103_v21 }
 0x18a   :  { %s124_s0 = spop %123 }
 0x18b   :  { %106 = sst [smem:[#allocation8]] %s124_s0 }
 0x18c   :  { %114 = dma.smem_to_hbm %s188_s1, 16, %s215_s2, [#allocation5]  }
 0x18d   :  { %183 = dma.done.wait [#allocation5], 16  }
 0x18e   :  { %184 = vsyncadd [#allocation5], 4294967280 }
 0x18f   :  { %118 = sfence }
 0x190   :  { %119 = vsyncpa [#allocation4], 1 }
 0x191   :  { %120 = vsyncpa [#allocation7], 1 }
 0x192   :  { %121 = vsyncpa [#allocation5], 1 }

</bundles_post_ra>
